<compile_context>
chip_gen: v6e
topology: v6e:2x2x1
jax: 0.10.0
libtpu: 0.0.40
codegen_flags: <defaults>
</compile_context>

<pallas_src>
import jax
import jax.numpy as jnp
from jax.experimental import pallas as pl
from jax.experimental.pallas import tpu as pltpu

EPS = 1e-5


# ---------------------------------------------------------------------------
# hardware / tiling helpers
# ---------------------------------------------------------------------------

def _tpu_vmem_bytes():
    """Physical VMEM of the local chip; conservative 64 MiB fallback (v7x)."""
    try:
        info = pltpu.get_tpu_info()
        for name in ("vmem_capacity_bytes", "vmem_bytes", "vmem_size_bytes"):
            v = getattr(info, name, None)
            if v:
                return int(v)
    except Exception:
        pass
    return 64 * 1024 * 1024


def _rows_per_tile(total_rows, rows_per_image, bytes_per_row, budget, align=16):
    """Largest whole-image row tile that divides total_rows, is `align`-row
    aligned (bf16 sublane packing) and fits the double-buffered VMEM budget."""
    n_imgs = max(1, total_rows // rows_per_image)
    cap_rows = max(rows_per_image, budget // max(1, bytes_per_row))
    best = None
    for k in range(1, n_imgs + 1):
        if n_imgs % k:
            continue
        t = k * rows_per_image
        if t % align == 0 and t <= cap_rows:
            best = t
    # Full first dim is always a legal block shape (fallback).
    return best if best is not None else total_rows


def _const_spec(shape):
    """BlockSpec for a small operand that is identical for every grid step."""
    nd = len(shape)
    return pl.BlockSpec(shape, lambda i, _nd=nd: (0,) * _nd)


# ---------------------------------------------------------------------------
# wrapper-side parameter folding (block-diagonal "pixel-parallel" weights)
# ---------------------------------------------------------------------------

def _tile_pix(v, w):
    """(C,) per-channel vector -> (1, W*C) per-pixel lane vector (x*C + c)."""
    return jnp.tile(v.reshape(1, -1), (1, w))


def _fold_bn(mean, var, gamma, beta):
    """Fold batch stats + affine into a single per-channel scale/shift."""
    scale = gamma * jax.lax.rsqrt(var + EPS)
    shift = beta - mean * scale
    return scale, shift


def _expand_1x1(wmat, w):
    """(cin, cout) 1x1-conv weight -> (W*cin, W*cout) block-diagonal matrix."""
    eye = jnp.eye(w, dtype=wmat.dtype)
    cin, cout = wmat.shape
    return jnp.einsum("xy,cd->xcyd", eye, wmat).reshape(w * cin, w * cout)


def _expand_conv_row(w_taps, w):
    """One kernel row (3, cmid, cmid) of the 3x3 conv -> (W*cmid, W*cmid)
    matrix that applies all three dx taps with 'SAME' W-boundary zeroing."""
    cmid = w_taps.shape[1]
    xs = jnp.arange(w)
    acc = jnp.zeros((w * cmid, w * cmid), w_taps.dtype)
    for j, dx in enumerate((-1, 0, 1)):
        xin = xs + dx
        valid = (xin >= 0) & (xin < w)
        sel = jnp.zeros((w, w), w_taps.dtype).at[
            jnp.clip(xin, 0, w - 1), xs].set(valid.astype(w_taps.dtype))
        acc = acc + jnp.einsum("xy,cd->xcyd", sel, w_taps[j]).reshape(
            w * cmid, w * cmid)
    return acc


# ---------------------------------------------------------------------------
# kernels (all grid axes are "parallel": no cross-step accumulators)
# ---------------------------------------------------------------------------

def _stats_slab(v):
    """Per-step partial stats as a full aligned (8, WC) slab: rows 0/1 hold
    sum / sum-of-squares, rows 2..7 are zero (no sub-sublane RMW stores)."""
    return jnp.concatenate(
        [jnp.sum(v, axis=0, keepdims=True),
         jnp.sum(v * v, axis=0, keepdims=True),
         jnp.zeros((6, v.shape[1]), jnp.float32)], axis=0)


def _stage1_kernel(x_ref, sc1_ref, sh1_ref, w1_ref, cb1_ref, h1_ref, s_ref):
    """h1 = ReLU(BN1(x)) @ W1_blockdiag + b1; emit per-step BN2 stats."""
    a1 = jnp.maximum(x_ref[...] * sc1_ref[...] + sh1_ref[...], 0.0)
    h1 = jnp.dot(a1, w1_ref[...], preferred_element_type=jnp.float32) + cb1_ref[...]
    h1_b = h1.astype(h1_ref.dtype)           # bf16 storage
    h1_ref[...] = h1_b
    s_ref[...] = _stats_slab(h1_b.astype(jnp.float32))


def _conv3x3_kernel(h1_ref, sc2_ref, sh2_ref, w2_ref, cb2_ref,
                    mup_ref, mdn_ref, h2_ref, s_ref):
    """BN2 + ReLU + 3x3 'SAME' conv: dx taps are folded into the three
    (W*C, W*C) row matrices; dy = +-1 is a one-row shift with a precomputed
    image-boundary mask.  Emits per-step BN3 stats."""
    a2 = jnp.maximum(h1_ref[...].astype(jnp.float32) * sc2_ref[...]
                     + sh2_ref[...], 0.0)
    wc = a2.shape[1]
    zr = jnp.zeros((1, wc), jnp.float32)
    # row r of a2_up is input row r-1 (dy=-1), row r of a2_dn is row r+1 (dy=+1)
    a2_up = jnp.concatenate([zr, a2[:-1, :]], axis=0) * mup_ref[...]
    a2_dn = jnp.concatenate([a2[1:, :], zr], axis=0) * mdn_ref[...]
    h2 = (jnp.dot(a2,    w2_ref[1], preferred_element_type=jnp.float32)
          + jnp.dot(a2_up, w2_ref[0], preferred_element_type=jnp.float32)
          + jnp.dot(a2_dn, w2_ref[2], preferred_element_type=jnp.float32)
          + cb2_ref[...])
    h2_b = h2.astype(h2_ref.dtype)            # bf16 storage
    h2_ref[...] = h2_b
    s_ref[...] = _stats_slab(h2_b.astype(jnp.float32))


def _make_stage3_kernel(use_skip_conv):
    """y = ReLU(BN3(h2)) @ W3_blockdiag + b3 + skip (128-lane-dense output)."""
    if use_skip_conv:
        def kernel(h2_ref, sc3_ref, sh3_ref, w3_ref, cb3_ref,
                   x_ref, ws_ref, bs_ref, o_ref):
            a3 = jnp.maximum(h2_ref[...].astype(jnp.float32) * sc3_ref[...]
                             + sh3_ref[...], 0.0)
            y = jnp.dot(a3, w3_ref[...],
                        preferred_element_type=jnp.float32) + cb3_ref[...]
            # TODO(synk): at channel widths >= 64 concatenate [W3; Ws] in the
            # wrapper and feed [a3 | x] as a single K=(cmid+ins)*W dot.
            y = y + jnp.dot(x_ref[...], ws_ref[...],
                            preferred_element_type=jnp.float32) + bs_ref[...]
            o_ref[...] = y
    else:
        def kernel(h2_ref, sc3_ref, sh3_ref, w3_ref, cb3_ref, x_ref, o_ref):
            a3 = jnp.maximum(h2_ref[...].astype(jnp.float32) * sc3_ref[...]
                             + sh3_ref[...], 0.0)
            y = jnp.dot(a3, w3_ref[...],
                        preferred_element_type=jnp.float32) + cb3_ref[...]
            o_ref[...] = y + x_ref[...]
    return kernel


# ---------------------------------------------------------------------------
# wrapper
# ---------------------------------------------------------------------------

def _partial_stats(s_part, ntiles, w, c, count):
    """Reduce per-step (8, W*C) stat slabs to per-channel mean / biased var."""
    s = s_part.reshape(ntiles, 8, w, c)
    mean = jnp.sum(s[:, 0], axis=(0, 1)) / count
    # One-pass E[x^2]-E[x]^2 in f32; fine for BN-scale activations.  Use a
    # per-channel shift / Welford merge if activations have a large mean.
    var = jnp.sum(s[:, 1], axis=(0, 1)) / count - mean * mean
    return mean, var


def _residual_forward(x_nchw, params, ins, outs):
    n, c, h, w = x_nchw.shape
    assert c == ins
    cmid = outs // 2
    rows = n * h
    count = jnp.float32(n * h * w)
    wc_in, wc_mid, wc_out = w * ins, w * cmid, w * outs

    # ---- BN1 statistics straight from the NCHW input (no extra kernel pass).
    mean1 = jnp.mean(x_nchw, axis=(0, 2, 3))
    var1 = jnp.var(x_nchw, axis=(0, 2, 3))            # biased, two-pass (stable)

    # TODO(synk): this NCHW->NHWC transpose is still a standalone XLA copy; it
    # could be folded into pass A with allow_input_fusion / an NCHW index_map.
    x_rows = jnp.transpose(x_nchw, (0, 2, 3, 1)).reshape(rows, wc_in)

    # Per-pixel-tiled BN scale/shift and conv biases (lane index = x*C + c).
    sc1, sh1 = _fold_bn(mean1, var1, params["bn1_g"].reshape(-1),
                        params["bn1_b"].reshape(-1))
    sc1_t, sh1_t = _tile_pix(sc1, w), _tile_pix(sh1, w)
    cb1_t = _tile_pix(params["cb1"].reshape(-1), w)
    cb2_t = _tile_pix(params["cb2"].reshape(-1), w)
    cb3_t = _tile_pix(params["cb3"].reshape(-1), w)

    # Block-diagonal ("pixel-parallel") weights -> lane-dense MXU operands.
    w1_bd = _expand_1x1(params["w1"], w)                         # (W*ins, W*cmid)
    w3_bd = _expand_1x1(params["w3"], w)                         # (W*cmid, W*outs)
    w2_rows = jnp.stack([_expand_conv_row(params["w2_hwio"][ky], w)
                         for ky in range(3)], axis=0)            # (3, W*cmid, W*cmid)

    # ---- generation-aware tiling --------------------------------------------
    phys_vmem = _tpu_vmem_bytes()
    vmem_limit = int(min(phys_vmem * 0.8, 96 * 1024 * 1024))
    # Worst-pass per-row bytes (double-buffered in + out blocks across passes).
    bytes_per_row = 2 * (wc_in * 4 + 2 * wc_mid * 2 + wc_mid * 4 + wc_out * 4)
    t = _rows_per_tile(rows, h, bytes_per_row, int(vmem_limit * 0.6), align=16)
    ntiles = rows // t
    grid = (ntiles,)
    cp = pltpu.CompilerParams(dimension_semantics=("parallel",),
                              vmem_limit_bytes=vmem_limit)

    row_spec = lambda width: pl.BlockSpec((t, width), lambda i: (i, 0))
    stat_spec = pl.BlockSpec((8, wc_mid), lambda i: (i, 0))

    # dy boundary masks (identical for every tile: tiles hold whole images).
    ridx = jnp.arange(t) % h
    mask_up = (ridx != 0).astype(jnp.float32).reshape(t, 1)
    mask_dn = (ridx != h - 1).astype(jnp.float32).reshape(t, 1)

    # ---- Pass A: BN1 + ReLU + 1x1 conv, fused BN2 partial stats -------------
    h1, s2p = pl.pallas_call(
        _stage1_kernel,
        grid=grid,
        in_specs=[row_spec(wc_in),
                  _const_spec((1, wc_in)), _const_spec((1, wc_in)),
                  _const_spec((wc_in, wc_mid)), _const_spec((1, wc_mid))],
        out_specs=(row_spec(wc_mid), stat_spec),
        out_shape=(jax.ShapeDtypeStruct((rows, wc_mid), jnp.bfloat16),
                   jax.ShapeDtypeStruct((ntiles * 8, wc_mid), jnp.float32)),
        compiler_params=cp,
    )(x_rows, sc1_t, sh1_t, w1_bd, cb1_t)

    mean2, var2 = _partial_stats(s2p, ntiles, w, cmid, count)
    sc2, sh2 = _fold_bn(mean2, var2, params["bn2_g"].reshape(-1),
                        params["bn2_b"].reshape(-1))
    sc2_t, sh2_t = _tile_pix(sc2, w), _tile_pix(sh2, w)

    # ---- Pass B: BN2 + ReLU + 3x3 conv, fused BN3 partial stats -------------
    h2, s3p = pl.pallas_call(
        _conv3x3_kernel,
        grid=grid,
        in_specs=[row_spec(wc_mid),
                  _const_spec((1, wc_mid)), _const_spec((1, wc_mid)),
                  _const_spec((3, wc_mid, wc_mid)), _const_spec((1, wc_mid)),
                  _const_spec((t, 1)), _const_spec((t, 1))],
        out_specs=(row_spec(wc_mid), stat_spec),
        out_shape=(jax.ShapeDtypeStruct((rows, wc_mid), jnp.bfloat16),
                   jax.ShapeDtypeStruct((ntiles * 8, wc_mid), jnp.float32)),
        compiler_params=cp,
    )(h1, sc2_t, sh2_t, w2_rows, cb2_t, mask_up, mask_dn)

    mean3, var3 = _partial_stats(s3p, ntiles, w, cmid, count)
    sc3, sh3 = _fold_bn(mean3, var3, params["bn3_g"].reshape(-1),
                        params["bn3_b"].reshape(-1))
    sc3_t, sh3_t = _tile_pix(sc3, w), _tile_pix(sh3, w)

    # ---- Pass C: BN3 + ReLU + 1x1 conv + residual add (lane-dense output) ---
    use_skip = (ins != outs)
    kernel_c = _make_stage3_kernel(use_skip)
    in_specs = [row_spec(wc_mid),
                _const_spec((1, wc_mid)), _const_spec((1, wc_mid)),
                _const_spec((wc_mid, wc_out)), _const_spec((1, wc_out)),
                row_spec(wc_in)]
    args = [h2, sc3_t, sh3_t, w3_bd, cb3_t, x_rows]
    if use_skip:
        in_specs += [_const_spec((wc_in, wc_out)), _const_spec((1, wc_out))]
        args += [_expand_1x1(params["ws"], w),
                 _tile_pix(params["bs"].reshape(-1), w)]

    y_rows = pl.pallas_call(
        kernel_c,
        grid=grid,
        in_specs=in_specs,
        out_specs=row_spec(wc_out),
        out_shape=jax.ShapeDtypeStruct((rows, wc_out), jnp.float32),
        compiler_params=cp,
    )(*args)

    return y_rows.reshape(n, h, w, outs)          # NHWC output


residual_forward = jax.jit(_residual_forward, static_argnums=(2, 3))


# ---------------------------------------------------------------------------
# pure-JAX reference (for correctness check)
# ---------------------------------------------------------------------------

def residual_reference(x_nchw, params, ins, outs):
    x = jnp.transpose(x_nchw, (0, 2, 3, 1))       # NHWC

    def bn_relu4(t, g, b):
        mean = jnp.mean(t, axis=(0, 1, 2), keepdims=True)
        var = jnp.mean((t - mean) ** 2, axis=(0, 1, 2), keepdims=True)
        return jnp.maximum((t - mean) * jax.lax.rsqrt(var + EPS) * g + b, 0.0)

    a1 = bn_relu4(x, params["bn1_g"], params["bn1_b"])
    h1 = jnp.einsum("nhwc,cd->nhwd", a1, params["w1"]) + params["cb1"]
    a2 = bn_relu4(h1, params["bn2_g"], params["bn2_b"])
    h2 = jax.lax.conv_general_dilated(
        a2, params["w2_hwio"], (1, 1), "SAME",
        dimension_numbers=("NHWC", "HWIO", "NHWC")) + params["cb2"]
    a3 = bn_relu4(h2, params["bn3_g"], params["bn3_b"])
    h3 = jnp.einsum("nhwc,cd->nhwd", a3, params["w3"]) + params["cb3"]
    if ins != outs:
        skip = jnp.einsum("nhwc,cd->nhwd", x, params["ws"]) + params["bs"]
    else:
        skip = x
    return h3 + skip


# ---------------------------------------------------------------------------
# parameter construction
# ---------------------------------------------------------------------------

def make_params(key, ins, outs):
    cmid = outs // 2
    ks = jax.random.split(key, 14)

    def u(k, shape, scale=0.3):
        return jax.random.uniform(k, shape, jnp.float32, -scale, scale)

    params = dict(
        w1=u(ks[0], (ins, cmid)),          cb1=u(ks[1], (1, cmid)),
        w2_hwio=u(ks[2], (3, 3, cmid, cmid)),
        cb2=u(ks[3], (1, cmid)),
        w3=u(ks[4], (cmid, outs)),         cb3=u(ks[5], (1, outs)),
        ws=u(ks[6], (ins, outs)),          bs=u(ks[7], (1, outs)),
        bn1_g=1.0 + u(ks[8], (1, ins), 0.1),   bn1_b=u(ks[9], (1, ins), 0.1),
        bn2_g=1.0 + u(ks[10], (1, cmid), 0.1), bn2_b=u(ks[11], (1, cmid), 0.1),
        bn3_g=1.0 + u(ks[12], (1, cmid), 0.1), bn3_b=u(ks[13], (1, cmid), 0.1),
    )
    return params


if __name__ == "__main__":
    ins, outs = 4, 8                   # ins != outs -> skip-conv path exercised
    N, H, W = 2, 16, 16

    key = jax.random.PRNGKey(0)
    kx, kp = jax.random.split(key)
    x = jax.random.normal(kx, (N, ins, H, W), jnp.float32)   # NCHW, like PyTorch
    params = make_params(kp, ins, outs)

    y = residual_forward(x, params, ins, outs)
    y = jax.block_until_ready(y)
    assert y.shape == (N, H, W, outs)

    y_ref = residual_reference(x, params, ins, outs)
    err = float(jnp.max(jnp.abs(y - y_ref)))
    # tolerance accounts for the bf16 storage of the h1/h2 intermediates
    assert jnp.allclose(y, y_ref, atol=3e-2, rtol=2e-2), err

    print("KERNEL_OK")
</pallas_src>

<mosaic_0001>
module attributes {stable_mosaic.version = 11 : i64} {
  func.func @_stage1_kernel(%arg0: i32, %arg1: memref<32x64xf32, #tpu.memory_space<vmem>>, %arg2: memref<1x64xf32, #tpu.memory_space<vmem>>, %arg3: memref<1x64xf32, #tpu.memory_space<vmem>>, %arg4: memref<64x64xf32, #tpu.memory_space<vmem>>, %arg5: memref<1x64xf32, #tpu.memory_space<vmem>>, %arg6: memref<32x64xbf16, #tpu.memory_space<vmem>>, %arg7: memref<8x64xf32, #tpu.memory_space<vmem>>) attributes {dimension_semantics = [#tpu.dimension_semantics<parallel>], iteration_bounds = array<i64: 1>, scalar_prefetch = 0 : i64, scratch_operands = 0 : i64, tpu.core_type = #tpu.core_type<tc>, window_params = [{transform_indices = @transform_0, window_bounds = array<i64: 32, 64>}, {pipeline_mode = #tpu.pipeline_mode<synchronous>, transform_indices = @transform_1, window_bounds = array<i64: 1, 64>}, {pipeline_mode = #tpu.pipeline_mode<synchronous>, transform_indices = @transform_2, window_bounds = array<i64: 1, 64>}, {pipeline_mode = #tpu.pipeline_mode<synchronous>, transform_indices = @transform_3, window_bounds = array<i64: 64, 64>}, {pipeline_mode = #tpu.pipeline_mode<synchronous>, transform_indices = @transform_4, window_bounds = array<i64: 1, 64>}, {transform_indices = @transform_5, window_bounds = array<i64: 32, 64>}, {transform_indices = @transform_6, window_bounds = array<i64: 8, 64>}]} {
    %c0 = arith.constant 0 : index
    %c0_0 = arith.constant 0 : index
    %0 = vector.load %arg1[%c0, %c0_0] : memref<32x64xf32, #tpu.memory_space<vmem>>, vector<32x64xf32>
    %c0_1 = arith.constant 0 : index
    %c0_2 = arith.constant 0 : index
    %1 = vector.load %arg2[%c0_1, %c0_2] : memref<1x64xf32, #tpu.memory_space<vmem>>, vector<1x64xf32>
    %2 = vector.broadcast %1 : vector<1x64xf32> to vector<32x64xf32>
    %3 = arith.mulf %0, %2 : vector<32x64xf32>
    %c0_3 = arith.constant 0 : index
    %c0_4 = arith.constant 0 : index
    %4 = vector.load %arg3[%c0_3, %c0_4] : memref<1x64xf32, #tpu.memory_space<vmem>>, vector<1x64xf32>
    %5 = vector.broadcast %4 : vector<1x64xf32> to vector<32x64xf32>
    %6 = arith.addf %3, %5 : vector<32x64xf32>
    %cst = arith.constant 0.000000e+00 : f32
    %7 = vector.broadcast %cst : f32 to vector<32x64xf32>
    %8 = arith.maximumf %6, %7 : vector<32x64xf32>
    %c0_5 = arith.constant 0 : index
    %c0_6 = arith.constant 0 : index
    %9 = vector.load %arg4[%c0_5, %c0_6] : memref<64x64xf32, #tpu.memory_space<vmem>>, vector<64x64xf32>
    %cst_7 = arith.constant dense<0.000000e+00> : vector<32x64xf32>
    %10 = tpu.matmul %8, %9, %cst_7 {dimension_numbers = #tpu.dot_dimension_numbers<[1], [0], [0], [1], [0, 0, 1, 1], [], []>} : vector<32x64xf32>, vector<64x64xf32>, vector<32x64xf32> -> vector<32x64xf32>
    %c0_8 = arith.constant 0 : index
    %c0_9 = arith.constant 0 : index
    %11 = vector.load %arg5[%c0_8, %c0_9] : memref<1x64xf32, #tpu.memory_space<vmem>>, vector<1x64xf32>
    %12 = vector.broadcast %11 : vector<1x64xf32> to vector<32x64xf32>
    %13 = arith.addf %10, %12 : vector<32x64xf32>
    %14 = arith.truncf %13 : vector<32x64xf32> to vector<32x64xbf16>
    %c0_10 = arith.constant 0 : index
    %c0_11 = arith.constant 0 : index
    %15 = vector.load %arg6[%c0_10, %c0_11] : memref<32x64xbf16, #tpu.memory_space<vmem>>, vector<32x64xbf16>
    tpu.vector_store %arg6[%c0_10, %c0_11], %14 {strides = array<i32>} : memref<32x64xbf16, #tpu.memory_space<vmem>>, vector<32x64xbf16>,
    %16 = arith.extf %14 : vector<32x64xbf16> to vector<32x64xf32>
    %cst_12 = arith.constant dense<0.000000e+00> : vector<64xf32>
    %17 = vector.multi_reduction <add>, %16, %cst_12 [0] : vector<32x64xf32> to vector<64xf32>
    %18 = vector.shape_cast %17 : vector<64xf32> to vector<1x64xf32>
    %19 = arith.mulf %16, %16 : vector<32x64xf32>
    %cst_13 = arith.constant dense<0.000000e+00> : vector<64xf32>
    %20 = vector.multi_reduction <add>, %19, %cst_13 [0] : vector<32x64xf32> to vector<64xf32>
    %21 = vector.shape_cast %20 : vector<64xf32> to vector<1x64xf32>
    %cst_14 = arith.constant 0.000000e+00 : f32
    %22 = vector.broadcast %cst_14 : f32 to vector<6x64xf32>
    %23 = tpu.concatenate %18, %21, %22 in 0 : vector<1x64xf32>, vector<1x64xf32>, vector<6x64xf32> -> vector<8x64xf32>
    %c0_15 = arith.constant 0 : index
    %c0_16 = arith.constant 0 : index
    %24 = vector.load %arg7[%c0_15, %c0_16] : memref<8x64xf32, #tpu.memory_space<vmem>>, vector<8x64xf32>
    tpu.vector_store %arg7[%c0_15, %c0_16], %23 {strides = array<i32>} : memref<8x64xf32, #tpu.memory_space<vmem>>, vector<8x64xf32>,
    return
  }
  func.func @transform_0(%arg0: i32) -> (i32, i32) {
    %c0_i32 = arith.constant 0 : i32
    %c0_i32_0 = arith.constant 0 : i32
    return %arg0, %c0_i32 : i32, i32
  }
  func.func @transform_1(%arg0: i32) -> (i32, i32) {
    %c0_i32 = arith.constant 0 : i32
    %c0_i32_0 = arith.constant 0 : i32
    %c0_i32_1 = arith.constant 0 : i32
    return %c0_i32, %c0_i32_0 : i32, i32
  }
  func.func @transform_2(%arg0: i32) -> (i32, i32) {
    %c0_i32 = arith.constant 0 : i32
    %c0_i32_0 = arith.constant 0 : i32
    %c0_i32_1 = arith.constant 0 : i32
    return %c0_i32, %c0_i32_0 : i32, i32
  }
  func.func @transform_3(%arg0: i32) -> (i32, i32) {
    %c0_i32 = arith.constant 0 : i32
    %c0_i32_0 = arith.constant 0 : i32
    %c0_i32_1 = arith.constant 0 : i32
    return %c0_i32, %c0_i32_0 : i32, i32
  }
  func.func @transform_4(%arg0: i32) -> (i32, i32) {
    %c0_i32 = arith.constant 0 : i32
    %c0_i32_0 = arith.constant 0 : i32
    %c0_i32_1 = arith.constant 0 : i32
    return %c0_i32, %c0_i32_0 : i32, i32
  }
  func.func @transform_5(%arg0: i32) -> (i32, i32) {
    %c0_i32 = arith.constant 0 : i32
    %c0_i32_0 = arith.constant 0 : i32
    return %arg0, %c0_i32 : i32, i32
  }
  func.func @transform_6(%arg0: i32) -> (i32, i32) {
    %c0_i32 = arith.constant 0 : i32
    %c0_i32_0 = arith.constant 0 : i32
    return %arg0, %c0_i32 : i32, i32
  }
}

module attributes {stable_mosaic.version = 11 : i64} {
  func.func @_conv3x3_kernel(%arg0: i32, %arg1: memref<32x64xbf16, #tpu.memory_space<vmem>>, %arg2: memref<1x64xf32, #tpu.memory_space<vmem>>, %arg3: memref<1x64xf32, #tpu.memory_space<vmem>>, %arg4: memref<3x64x64xf32, #tpu.memory_space<vmem>>, %arg5: memref<1x64xf32, #tpu.memory_space<vmem>>, %arg6: memref<32x1xf32, #tpu.memory_space<vmem>>, %arg7: memref<32x1xf32, #tpu.memory_space<vmem>>, %arg8: memref<32x64xbf16, #tpu.memory_space<vmem>>, %arg9: memref<8x64xf32, #tpu.memory_space<vmem>>) attributes {dimension_semantics = [#tpu.dimension_semantics<parallel>], iteration_bounds = array<i64: 1>, scalar_prefetch = 0 : i64, scratch_operands = 0 : i64, tpu.core_type = #tpu.core_type<tc>, window_params = [{transform_indices = @transform_0, window_bounds = array<i64: 32, 64>}, {pipeline_mode = #tpu.pipeline_mode<synchronous>, transform_indices = @transform_1, window_bounds = array<i64: 1, 64>}, {pipeline_mode = #tpu.pipeline_mode<synchronous>, transform_indices = @transform_2, window_bounds = array<i64: 1, 64>}, {pipeline_mode = #tpu.pipeline_mode<synchronous>, transform_indices = @transform_3, window_bounds = array<i64: 3, 64, 64>}, {pipeline_mode = #tpu.pipeline_mode<synchronous>, transform_indices = @transform_4, window_bounds = array<i64: 1, 64>}, {pipeline_mode = #tpu.pipeline_mode<synchronous>, transform_indices = @transform_5, window_bounds = array<i64: 32, 1>}, {pipeline_mode = #tpu.pipeline_mode<synchronous>, transform_indices = @transform_6, window_bounds = array<i64: 32, 1>}, {transform_indices = @transform_7, window_bounds = array<i64: 32, 64>}, {transform_indices = @transform_8, window_bounds = array<i64: 8, 64>}]} {
    %c0 = arith.constant 0 : index
    %c0_0 = arith.constant 0 : index
    %0 = vector.load %arg1[%c0, %c0_0] : memref<32x64xbf16, #tpu.memory_space<vmem>>, vector<32x64xbf16>
    %1 = arith.extf %0 : vector<32x64xbf16> to vector<32x64xf32>
    %c0_1 = arith.constant 0 : index
    %c0_2 = arith.constant 0 : index
    %2 = vector.load %arg2[%c0_1, %c0_2] : memref<1x64xf32, #tpu.memory_space<vmem>>, vector<1x64xf32>
    %3 = vector.broadcast %2 : vector<1x64xf32> to vector<32x64xf32>
    %4 = arith.mulf %1, %3 : vector<32x64xf32>
    %c0_3 = arith.constant 0 : index
    %c0_4 = arith.constant 0 : index
    %5 = vector.load %arg3[%c0_3, %c0_4] : memref<1x64xf32, #tpu.memory_space<vmem>>, vector<1x64xf32>
    %6 = vector.broadcast %5 : vector<1x64xf32> to vector<32x64xf32>
    %7 = arith.addf %4, %6 : vector<32x64xf32>
    %cst = arith.constant 0.000000e+00 : f32
    %8 = vector.broadcast %cst : f32 to vector<32x64xf32>
    %9 = arith.maximumf %7, %8 : vector<32x64xf32>
    %cst_5 = arith.constant 0.000000e+00 : f32
    %10 = vector.broadcast %cst_5 : f32 to vector<1x64xf32>
    %11 = vector.extract_strided_slice %9 {offsets = [0, 0], sizes = [31, 64], strides = [1, 1]} : vector<32x64xf32> to vector<31x64xf32>
    %12 = tpu.concatenate %10, %11 in 0 : vector<1x64xf32>, vector<31x64xf32> -> vector<32x64xf32>
    %c0_6 = arith.constant 0 : index
    %c0_7 = arith.constant 0 : index
    %13 = vector.load %arg6[%c0_6, %c0_7] : memref<32x1xf32, #tpu.memory_space<vmem>>, vector<32x1xf32>
    %14 = vector.broadcast %13 : vector<32x1xf32> to vector<32x64xf32>
    %15 = arith.mulf %12, %14 : vector<32x64xf32>
    %16 = vector.extract_strided_slice %9 {offsets = [1, 0], sizes = [31, 64], strides = [1, 1]} : vector<32x64xf32> to vector<31x64xf32>
    %17 = tpu.concatenate %16, %10 in 0 : vector<31x64xf32>, vector<1x64xf32> -> vector<32x64xf32>
    %c0_8 = arith.constant 0 : index
    %c0_9 = arith.constant 0 : index
    %18 = vector.load %arg7[%c0_8, %c0_9] : memref<32x1xf32, #tpu.memory_space<vmem>>, vector<32x1xf32>
    %19 = vector.broadcast %18 : vector<32x1xf32> to vector<32x64xf32>
    %20 = arith.mulf %17, %19 : vector<32x64xf32>
    %c1 = arith.constant 1 : index
    %c0_10 = arith.constant 0 : index
    %c0_11 = arith.constant 0 : index
    %21 = vector.load %arg4[%c1, %c0_10, %c0_11] : memref<3x64x64xf32, #tpu.memory_space<vmem>>, vector<1x64x64xf32>
    %22 = vector.shape_cast %21 : vector<1x64x64xf32> to vector<64x64xf32>
    %cst_12 = arith.constant dense<0.000000e+00> : vector<32x64xf32>
    %23 = tpu.matmul %9, %22, %cst_12 {dimension_numbers = #tpu.dot_dimension_numbers<[1], [0], [0], [1], [0, 0, 1, 1], [], []>} : vector<32x64xf32>, vector<64x64xf32>, vector<32x64xf32> -> vector<32x64xf32>
    %c0_13 = arith.constant 0 : index
    %c0_14 = arith.constant 0 : index
    %c0_15 = arith.constant 0 : index
    %24 = vector.load %arg4[%c0_13, %c0_14, %c0_15] : memref<3x64x64xf32, #tpu.memory_space<vmem>>, vector<1x64x64xf32>
    %25 = vector.shape_cast %24 : vector<1x64x64xf32> to vector<64x64xf32>
    %cst_16 = arith.constant dense<0.000000e+00> : vector<32x64xf32>
    %26 = tpu.matmul %15, %25, %cst_16 {dimension_numbers = #tpu.dot_dimension_numbers<[1], [0], [0], [1], [0, 0, 1, 1], [], []>} : vector<32x64xf32>, vector<64x64xf32>, vector<32x64xf32> -> vector<32x64xf32>
    %27 = arith.addf %23, %26 : vector<32x64xf32>
    %c2 = arith.constant 2 : index
    %c0_17 = arith.constant 0 : index
    %c0_18 = arith.constant 0 : index
    %28 = vector.load %arg4[%c2, %c0_17, %c0_18] : memref<3x64x64xf32, #tpu.memory_space<vmem>>, vector<1x64x64xf32>
    %29 = vector.shape_cast %28 : vector<1x64x64xf32> to vector<64x64xf32>
    %cst_19 = arith.constant dense<0.000000e+00> : vector<32x64xf32>
    %30 = tpu.matmul %20, %29, %cst_19 {dimension_numbers = #tpu.dot_dimension_numbers<[1], [0], [0], [1], [0, 0, 1, 1], [], []>} : vector<32x64xf32>, vector<64x64xf32>, vector<32x64xf32> -> vector<32x64xf32>
    %31 = arith.addf %27, %30 : vector<32x64xf32>
    %c0_20 = arith.constant 0 : index
    %c0_21 = arith.constant 0 : index
    %32 = vector.load %arg5[%c0_20, %c0_21] : memref<1x64xf32, #tpu.memory_space<vmem>>, vector<1x64xf32>
    %33 = vector.broadcast %32 : vector<1x64xf32> to vector<32x64xf32>
    %34 = arith.addf %31, %33 : vector<32x64xf32>
    %35 = arith.truncf %34 : vector<32x64xf32> to vector<32x64xbf16>
    %c0_22 = arith.constant 0 : index
    %c0_23 = arith.constant 0 : index
    %36 = vector.load %arg8[%c0_22, %c0_23] : memref<32x64xbf16, #tpu.memory_space<vmem>>, vector<32x64xbf16>
    tpu.vector_store %arg8[%c0_22, %c0_23], %35 {strides = array<i32>} : memref<32x64xbf16, #tpu.memory_space<vmem>>, vector<32x64xbf16>,
    %37 = arith.extf %35 : vector<32x64xbf16> to vector<32x64xf32>
    %cst_24 = arith.constant dense<0.000000e+00> : vector<64xf32>
    %38 = vector.multi_reduction <add>, %37, %cst_24 [0] : vector<32x64xf32> to vector<64xf32>
    %39 = vector.shape_cast %38 : vector<64xf32> to vector<1x64xf32>
    %40 = arith.mulf %37, %37 : vector<32x64xf32>
    %cst_25 = arith.constant dense<0.000000e+00> : vector<64xf32>
    %41 = vector.multi_reduction <add>, %40, %cst_25 [0] : vector<32x64xf32> to vector<64xf32>
    %42 = vector.shape_cast %41 : vector<64xf32> to vector<1x64xf32>
    %cst_26 = arith.constant 0.000000e+00 : f32
    %43 = vector.broadcast %cst_26 : f32 to vector<6x64xf32>
    %44 = tpu.concatenate %39, %42, %43 in 0 : vector<1x64xf32>, vector<1x64xf32>, vector<6x64xf32> -> vector<8x64xf32>
    %c0_27 = arith.constant 0 : index
    %c0_28 = arith.constant 0 : index
    %45 = vector.load %arg9[%c0_27, %c0_28] : memref<8x64xf32, #tpu.memory_space<vmem>>, vector<8x64xf32>
    tpu.vector_store %arg9[%c0_27, %c0_28], %44 {strides = array<i32>} : memref<8x64xf32, #tpu.memory_space<vmem>>, vector<8x64xf32>,
    return
  }
  func.func @transform_0(%arg0: i32) -> (i32, i32) {
    %c0_i32 = arith.constant 0 : i32
    %c0_i32_0 = arith.constant 0 : i32
    return %arg0, %c0_i32 : i32, i32
  }
  func.func @transform_1(%arg0: i32) -> (i32, i32) {
    %c0_i32 = arith.constant 0 : i32
    %c0_i32_0 = arith.constant 0 : i32
    %c0_i32_1 = arith.constant 0 : i32
    return %c0_i32, %c0_i32_0 : i32, i32
  }
  func.func @transform_2(%arg0: i32) -> (i32, i32) {
    %c0_i32 = arith.constant 0 : i32
    %c0_i32_0 = arith.constant 0 : i32
    %c0_i32_1 = arith.constant 0 : i32
    return %c0_i32, %c0_i32_0 : i32, i32
  }
  func.func @transform_3(%arg0: i32) -> (i32, i32, i32) {
    %c0_i32 = arith.constant 0 : i32
    %c0_i32_0 = arith.constant 0 : i32
    %c0_i32_1 = arith.constant 0 : i32
    %c0_i32_2 = arith.constant 0 : i32
    return %c0_i32, %c0_i32_0, %c0_i32_1 : i32, i32, i32
  }
  func.func @transform_4(%arg0: i32) -> (i32, i32) {
    %c0_i32 = arith.constant 0 : i32
    %c0_i32_0 = arith.constant 0 : i32
    %c0_i32_1 = arith.constant 0 : i32
    return %c0_i32, %c0_i32_0 : i32, i32
  }
  func.func @transform_5(%arg0: i32) -> (i32, i32) {
    %c0_i32 = arith.constant 0 : i32
    %c0_i32_0 = arith.constant 0 : i32
    %c0_i32_1 = arith.constant 0 : i32
    return %c0_i32, %c0_i32_0 : i32, i32
  }
  func.func @transform_6(%arg0: i32) -> (i32, i32) {
    %c0_i32 = arith.constant 0 : i32
    %c0_i32_0 = arith.constant 0 : i32
    %c0_i32_1 = arith.constant 0 : i32
    return %c0_i32, %c0_i32_0 : i32, i32
  }
  func.func @transform_7(%arg0: i32) -> (i32, i32) {
    %c0_i32 = arith.constant 0 : i32
    %c0_i32_0 = arith.constant 0 : i32
    return %arg0, %c0_i32 : i32, i32
  }
  func.func @transform_8(%arg0: i32) -> (i32, i32) {
    %c0_i32 = arith.constant 0 : i32
    %c0_i32_0 = arith.constant 0 : i32
    return %arg0, %c0_i32 : i32, i32
  }
}

module attributes {stable_mosaic.version = 11 : i64} {
  func.func @kernel(%arg0: i32, %arg1: memref<32x64xbf16, #tpu.memory_space<vmem>>, %arg2: memref<1x64xf32, #tpu.memory_space<vmem>>, %arg3: memref<1x64xf32, #tpu.memory_space<vmem>>, %arg4: memref<64x128xf32, #tpu.memory_space<vmem>>, %arg5: memref<1x128xf32, #tpu.memory_space<vmem>>, %arg6: memref<32x64xf32, #tpu.memory_space<vmem>>, %arg7: memref<64x128xf32, #tpu.memory_space<vmem>>, %arg8: memref<1x128xf32, #tpu.memory_space<vmem>>, %arg9: memref<32x128xf32, #tpu.memory_space<vmem>>) attributes {dimension_semantics = [#tpu.dimension_semantics<parallel>], iteration_bounds = array<i64: 1>, scalar_prefetch = 0 : i64, scratch_operands = 0 : i64, tpu.core_type = #tpu.core_type<tc>, window_params = [{transform_indices = @transform_0, window_bounds = array<i64: 32, 64>}, {pipeline_mode = #tpu.pipeline_mode<synchronous>, transform_indices = @transform_1, window_bounds = array<i64: 1, 64>}, {pipeline_mode = #tpu.pipeline_mode<synchronous>, transform_indices = @transform_2, window_bounds = array<i64: 1, 64>}, {pipeline_mode = #tpu.pipeline_mode<synchronous>, transform_indices = @transform_3, window_bounds = array<i64: 64, 128>}, {pipeline_mode = #tpu.pipeline_mode<synchronous>, transform_indices = @transform_4, window_bounds = array<i64: 1, 128>}, {transform_indices = @transform_5, window_bounds = array<i64: 32, 64>}, {pipeline_mode = #tpu.pipeline_mode<synchronous>, transform_indices = @transform_6, window_bounds = array<i64: 64, 128>}, {pipeline_mode = #tpu.pipeline_mode<synchronous>, transform_indices = @transform_7, window_bounds = array<i64: 1, 128>}, {transform_indices = @transform_8, window_bounds = array<i64: 32, 128>}]} {
    %c0 = arith.constant 0 : index
    %c0_0 = arith.constant 0 : index
    %0 = vector.load %arg1[%c0, %c0_0] : memref<32x64xbf16, #tpu.memory_space<vmem>>, vector<32x64xbf16>
    %1 = arith.extf %0 : vector<32x64xbf16> to vector<32x64xf32>
    %c0_1 = arith.constant 0 : index
    %c0_2 = arith.constant 0 : index
    %2 = vector.load %arg2[%c0_1, %c0_2] : memref<1x64xf32, #tpu.memory_space<vmem>>, vector<1x64xf32>
    %3 = vector.broadcast %2 : vector<1x64xf32> to vector<32x64xf32>
    %4 = arith.mulf %1, %3 : vector<32x64xf32>
    %c0_3 = arith.constant 0 : index
    %c0_4 = arith.constant 0 : index
    %5 = vector.load %arg3[%c0_3, %c0_4] : memref<1x64xf32, #tpu.memory_space<vmem>>, vector<1x64xf32>
    %6 = vector.broadcast %5 : vector<1x64xf32> to vector<32x64xf32>
    %7 = arith.addf %4, %6 : vector<32x64xf32>
    %cst = arith.constant 0.000000e+00 : f32
    %8 = vector.broadcast %cst : f32 to vector<32x64xf32>
    %9 = arith.maximumf %7, %8 : vector<32x64xf32>
    %c0_5 = arith.constant 0 : index
    %c0_6 = arith.constant 0 : index
    %10 = vector.load %arg4[%c0_5, %c0_6] : memref<64x128xf32, #tpu.memory_space<vmem>>, vector<64x128xf32>
    %cst_7 = arith.constant dense<0.000000e+00> : vector<32x128xf32>
    %11 = tpu.matmul %9, %10, %cst_7 {dimension_numbers = #tpu.dot_dimension_numbers<[1], [0], [0], [1], [0, 0, 1, 1], [], []>} : vector<32x64xf32>, vector<64x128xf32>, vector<32x128xf32> -> vector<32x128xf32>
    %c0_8 = arith.constant 0 : index
    %c0_9 = arith.constant 0 : index
    %12 = vector.load %arg5[%c0_8, %c0_9] : memref<1x128xf32, #tpu.memory_space<vmem>>, vector<1x128xf32>
    %13 = vector.broadcast %12 : vector<1x128xf32> to vector<32x128xf32>
    %14 = arith.addf %11, %13 : vector<32x128xf32>
    %c0_10 = arith.constant 0 : index
    %c0_11 = arith.constant 0 : index
    %15 = vector.load %arg6[%c0_10, %c0_11] : memref<32x64xf32, #tpu.memory_space<vmem>>, vector<32x64xf32>
    %c0_12 = arith.constant 0 : index
    %c0_13 = arith.constant 0 : index
    %16 = vector.load %arg7[%c0_12, %c0_13] : memref<64x128xf32, #tpu.memory_space<vmem>>, vector<64x128xf32>
    %cst_14 = arith.constant dense<0.000000e+00> : vector<32x128xf32>
    %17 = tpu.matmul %15, %16, %cst_14 {dimension_numbers = #tpu.dot_dimension_numbers<[1], [0], [0], [1], [0, 0, 1, 1], [], []>} : vector<32x64xf32>, vector<64x128xf32>, vector<32x128xf32> -> vector<32x128xf32>
    %18 = arith.addf %14, %17 : vector<32x128xf32>
    %c0_15 = arith.constant 0 : index
    %c0_16 = arith.constant 0 : index
    %19 = vector.load %arg8[%c0_15, %c0_16] : memref<1x128xf32, #tpu.memory_space<vmem>>, vector<1x128xf32>
    %20 = vector.broadcast %19 : vector<1x128xf32> to vector<32x128xf32>
    %21 = arith.addf %18, %20 : vector<32x128xf32>
    %c0_17 = arith.constant 0 : index
    %c0_18 = arith.constant 0 : index
    %22 = vector.load %arg9[%c0_17, %c0_18] : memref<32x128xf32, #tpu.memory_space<vmem>>, vector<32x128xf32>
    tpu.vector_store %arg9[%c0_17, %c0_18], %21 {strides = array<i32>} : memref<32x128xf32, #tpu.memory_space<vmem>>, vector<32x128xf32>,
    return
  }
  func.func @transform_0(%arg0: i32) -> (i32, i32) {
    %c0_i32 = arith.constant 0 : i32
    %c0_i32_0 = arith.constant 0 : i32
    return %arg0, %c0_i32 : i32, i32
  }
  func.func @transform_1(%arg0: i32) -> (i32, i32) {
    %c0_i32 = arith.constant 0 : i32
    %c0_i32_0 = arith.constant 0 : i32
    %c0_i32_1 = arith.constant 0 : i32
    return %c0_i32, %c0_i32_0 : i32, i32
  }
  func.func @transform_2(%arg0: i32) -> (i32, i32) {
    %c0_i32 = arith.constant 0 : i32
    %c0_i32_0 = arith.constant 0 : i32
    %c0_i32_1 = arith.constant 0 : i32
    return %c0_i32, %c0_i32_0 : i32, i32
  }
  func.func @transform_3(%arg0: i32) -> (i32, i32) {
    %c0_i32 = arith.constant 0 : i32
    %c0_i32_0 = arith.constant 0 : i32
    %c0_i32_1 = arith.constant 0 : i32
    return %c0_i32, %c0_i32_0 : i32, i32
  }
  func.func @transform_4(%arg0: i32) -> (i32, i32) {
    %c0_i32 = arith.constant 0 : i32
    %c0_i32_0 = arith.constant 0 : i32
    %c0_i32_1 = arith.constant 0 : i32
    return %c0_i32, %c0_i32_0 : i32, i32
  }
  func.func @transform_5(%arg0: i32) -> (i32, i32) {
    %c0_i32 = arith.constant 0 : i32
    %c0_i32_0 = arith.constant 0 : i32
    return %arg0, %c0_i32 : i32, i32
  }
  func.func @transform_6(%arg0: i32) -> (i32, i32) {
    %c0_i32 = arith.constant 0 : i32
    %c0_i32_0 = arith.constant 0 : i32
    %c0_i32_1 = arith.constant 0 : i32
    return %c0_i32, %c0_i32_0 : i32, i32
  }
  func.func @transform_7(%arg0: i32) -> (i32, i32) {
    %c0_i32 = arith.constant 0 : i32
    %c0_i32_0 = arith.constant 0 : i32
    %c0_i32_1 = arith.constant 0 : i32
    return %c0_i32, %c0_i32_0 : i32, i32
  }
  func.func @transform_8(%arg0: i32) -> (i32, i32) {
    %c0_i32 = arith.constant 0 : i32
    %c0_i32_0 = arith.constant 0 : i32
    return %arg0, %c0_i32 : i32, i32
  }
}

</mosaic_0001>

<bundles_post_ra>
// kernel: _residual_forward.3
= control target key start
LH: loop header
LB: loop body
LE: loop exit
PB: predicated region body
PF: predicated region fallthrough
CT: control target
= control target key end

     0   :  { %vm67_vm0 = vcmask 523264   ;;  %vm181_vm1 = vcmask 519168   ;;  %vm220_vm2 = vcmask 1040384   ;;  %vm222_vm3 = vcmask 1041408   ;;  %s410_s3 = inlined_call_operand.vmem [shape: f32[64,64], index: 3, kind: input, shape index: {}]   ;;  %s411_s0 = inlined_call_operand.vmem [shape: f32[32,64], index: 0, kind: input, shape index: {}]   ;;  %s412_s1 = inlined_call_operand.vmem [shape: f32[1,64], index: 1, kind: input, shape index: {}]   ;;  %s413_s2 = inlined_call_operand.vmem [shape: f32[1,64], index: 2, kind: input, shape index: {}]   ;;  %s414_s4 = inlined_call_operand.vmem [shape: f32[1,64], index: 4, kind: input, shape index: {}]   ;;  %s415_s5 = inlined_call_operand.vmem [shape: bf16[32,64], index: 5, kind: output, shape index: {0}]   ;;  %s416_s6 = inlined_call_operand.vmem [shape: f32[8,64], index: 6, kind: output, shape index: {1}]  }
   0x1   :  { %v59_v0 = vld [vmem:[%s410_s3 + $0x38] sm:$0xff]  ;;  %v58_v1 = vld [vmem:[%s410_s3 + $0x30] sm:$0xff]  ;;  %v57_v2 = vld [vmem:[%s410_s3 + $0x28] sm:$0xff] }
   0x2   :  { %260 = vmatprep.subr.mxu0 %v59_v0  ;;  %282 = vmatprep.subr.mxu1 %v59_v0  ;;  %v22_v3 = vld [vmem:[%s411_s0] sm:$0xff]  ;;  %v24_v5 = vld [vmem:[%s411_s0 + $0x10] sm:$0xff]  ;;  %v23_v7 = vld [vmem:[%s411_s0 + $0x8] sm:$0xff] }
   0x3   :  { %261 = vmatpush3.msra.mxu0 %v59_v0  ;;  %290 = vmatpush3.msra.mxu1 %v59_v0  ;;  %v233_v4 = vld [vmem:[%s412_s1] ss:$0 sm:$0xff]  ;;  %v25_v8 = vld [vmem:[%s411_s0 + $0x18] sm:$0xff]  ;;  %v54_v15 = vld [vmem:[%s410_s3 + $0x10] sm:$0xff] }
   0x4   :  { %262 = vmatprep.subr.mxu0 %v58_v1  ;;  %283 = vmatprep.subr.mxu1 %v58_v1  ;;  %v56_v6 = vld [vmem:[%s410_s3 + $0x20] sm:$0xff]  ;;  %v33_v9 = vmul.f32 %v233_v4, %v22_v3  ;;  %v35_v10 = vmul.f32 %v233_v4, %v24_v5  ;;  %v55_v11 = vld [vmem:[%s410_s3 + $0x18] sm:$0xff]  ;;  %v34_v13 = vmul.f32 %v233_v4, %v23_v7  ;;  %v53_v18 = vld [vmem:[%s410_s3 + $0x8] sm:$0xff] }
   0x5   :  { %263 = vmatpush3.msra.mxu0 %v58_v1  ;;  %291 = vmatpush3.msra.mxu1 %v58_v1  ;;  %v234_v12 = vld [vmem:[%s413_s2] ss:$0 sm:$0xff]  ;;  %v36_v14 = vmul.f32 %v233_v4, %v25_v8 }
   0x6   :  { %264 = vmatprep.subr.mxu0 %v57_v2  ;;  %284 = vmatprep.subr.mxu1 %v57_v2  ;;  %v44_v16 = vadd.f32 %v234_v12, %v33_v9  ;;  %v46_v17 = vadd.f32 %v234_v12, %v35_v10  ;;  %v45_v19 = vadd.f32 %v234_v12, %v34_v13  ;;  %v52_v21 = vld [vmem:[%s410_s3] sm:$0xff] }
   0x7   :  { %265 = vmatpush3.msra.mxu0 %v57_v2  ;;  %292 = vmatpush3.msra.mxu1 %v57_v2  ;;  %v47_v20 = vadd.f32 %v234_v12, %v36_v14  ;;  %v235_v26 = vld [vmem:[%s414_s4] ss:$0 sm:$0xff] }
   0x8   :  { %266 = vmatprep.subr.mxu0 %v56_v6  ;;  %285 = vmatprep.subr.mxu1 %v56_v6  ;;  %v48_v22 = vmax.f32 %v44_v16, 0.0  ;;  %v50_v23 = vmax.f32 %v46_v17, 0.0  ;;  %v49_v24 = vmax.f32 %v45_v19, 0.0 }
   0x9   :  { %267 = vmatpush3.msra.mxu0 %v56_v6  ;;  %293 = vmatpush3.msra.mxu1 %v56_v6  ;;  %v51_v25 = vmax.f32 %v47_v20, 0.0 }
   0xa   :  { %268 = vmatprep.subr.mxu0 %v55_v11  ;;  %286 = vmatprep.subr.mxu1 %v55_v11 }
   0xb   :  { %269 = vmatpush3.msra.mxu0 %v55_v11  ;;  %294 = vmatpush3.msra.mxu1 %v55_v11 }
   0xc   :  { %270 = vmatprep.subr.mxu0 %v54_v15  ;;  %287 = vmatprep.subr.mxu1 %v54_v15 }
   0xd   :  { %271 = vmatpush3.msra.mxu0 %v54_v15  ;;  %295 = vmatpush3.msra.mxu1 %v54_v15 }
   0xe   :  { %272 = vmatprep.subr.mxu0 %v53_v18  ;;  %288 = vmatprep.subr.mxu1 %v53_v18 }
   0xf   :  { %273 = vmatpush3.msra.mxu0 %v53_v18  ;;  %296 = vmatpush3.msra.mxu1 %v53_v18 }
  0x10   :  { %274 = vmatprep.subr.mxu0 %v52_v21  ;;  %289 = vmatprep.subr.mxu1 %v52_v21 }
  0x11   :  { %275 = vmatpush3.msra.mxu0 %v52_v21  ;;  %297 = vmatpush3.msra.mxu1 %v52_v21 }
  0x12   :  { %276 = vmatprep.mubr.msk.f32.mxu0 %vm67_vm0, %v48_v22  ;;  %279 = vmatprep.mubr.msk.f32.mxu1 %vm67_vm0, %v50_v23 }
  0x13   :  { %277 = vmatmul.mubr.msk.f32.vlgmr.msra.gmra.mxu0 %vm67_vm0, %v49_v24  ;;  %280 = vmatmul.mubr.msk.f32.vlgmr.msra.gmra.mxu1 %vm67_vm0, %v51_v25 }
  0xd3   :  { %v278_v27 = vpop.f32.mrf.mxu0  ;;  %v281_v28 = vpop.f32.mrf.mxu1 }
  0xd4   :  { %v152_v29 = vadd.f32 %v278_v27, %v235_v26  ;;  %v162_v30 = vadd.f32 %v281_v28, %v235_v26 }
  0xd5   :  { %v146_v31 = vpop.f32.mrf.mxu0  ;;  %v156_v32 = vpop.f32.mrf.mxu1 }
  0xd6   :  { %v245_v33 = vpack.c.bf16 %v152_v29, %v152_v29  ;;  %v247_v34 = vpack.c.bf16 %v162_v30, %v162_v30  ;;  %v147_v35 = vadd.f32 %v235_v26, %v146_v31  ;;  %v157_v36 = vadd.f32 %v235_v26, %v156_v32 }
  0xd8   :  { %183 = vst.msk [vmem:[%s415_s5 + $0x4] sm:$0xf] %vm181_vm1, %v245_v33  ;;  %185 = vst.msk [vmem:[%s415_s5 + $0xc] sm:$0xf] %vm181_vm1, %v247_v34  ;;  %v165_v37 = vpack.c.bf16 %v152_v29, %v147_v35  ;;  %v244_v38 = vpack.c.bf16 %v147_v35, %v147_v35  ;;  %v166_v39 = vpack.c.bf16 %v162_v30, %v157_v36 }
  0xd9   :  { %v246_v40 = vpack.c.bf16 %v157_v36, %v157_v36 }
  0xda   :  { %182 = vst.msk [vmem:[%s415_s5] sm:$0xf] %vm181_vm1, %v244_v38  ;;  %v186_v41 = vunpack.c.l.bf16 %v165_v37  ;;  %v187_v42 = vunpack.c.h.bf16 %v165_v37  ;;  %v188_v43 = vunpack.c.l.bf16 %v166_v39  ;;  %v189_v44 = vunpack.c.h.bf16 %v166_v39 }
  0xdb   :  { %184 = vst.msk [vmem:[%s415_s5 + $0x8] sm:$0xf] %vm181_vm1, %v246_v40 }
  0xdc   :  { %v190_v45 = vsel %vm67_vm0, %v186_v41, 0.0  ;;  %v191_v46 = vsel %vm67_vm0, %v187_v42, 0.0  ;;  %v203_v47 = vmul.f32 %v186_v41, %v186_v41  ;;  %v204_v48 = vmul.f32 %v187_v42, %v187_v42 }
  0xdd   :  { %v192_v49 = vadd.f32 %v191_v46, %v190_v45  ;;  %v205_v50 = vmul.f32 %v188_v43, %v188_v43  ;;  %v193_v53 = vsel %vm67_vm0, %v188_v43, 0.0  ;;  %v206_v54 = vmul.f32 %v189_v44, %v189_v44 }
  0xde   :  { %v207_v51 = vsel %vm67_vm0, %v203_v47, 0.0  ;;  %v208_v52 = vsel %vm67_vm0, %v204_v48, 0.0  ;;  %v195_v57 = vsel %vm67_vm0, %v189_v44, 0.0 }
  0xdf   :  { %v209_v55 = vadd.f32 %v208_v52, %v207_v51  ;;  %v194_v56 = vadd.f32 %v193_v53, %v192_v49  ;;  %v210_v58 = vsel %vm67_vm0, %v205_v50, 0.0  ;;  %v212_v61 = vsel %vm67_vm0, %v206_v54, 0.0 }
  0xe1   :  { %v196_v59 = vadd.f32 %v195_v57, %v194_v56  ;;  %v211_v60 = vadd.f32 %v210_v58, %v209_v55 }
  0xe3   :  { %v197_v62 = vrot.slane %v196_v59, 4  ;;  %v213_v63 = vadd.f32 %v212_v61, %v211_v60 }
  0xe5   :  { %v198_v0 = vadd.f32 %v197_v62, %v196_v59  ;;  %v214_v1 = vrot.slane %v213_v63, 4 }
  0xe7   :  { %v199_v2 = vrot.slane %v198_v0, 2  ;;  %v215_v3 = vadd.f32 %v214_v1, %v213_v63 }
  0xe9   :  { %v200_v4 = vadd.f32 %v199_v2, %v198_v0  ;;  %v216_v5 = vrot.slane %v215_v3, 2 }
  0xeb   :  { %v201_v6 = vrot.slane %v200_v4, 1  ;;  %v217_v7 = vadd.f32 %v216_v5, %v215_v3 }
  0xed   :  { %v218_v8 = vrot.slane %v217_v7, 1  ;;  %v202_v9 = vadd.f32 %v201_v6, %v200_v4 }
  0xef   :  { %v219_v10 = vadd.f32 %v218_v8, %v217_v7 }
  0xf1   :  { %v221_v11 = vsel %vm220_vm2, %v202_v9, %v219_v10 }
  0xf2   :  { %v223_v12 = vsel %vm222_vm3, %v221_v11, 0.0 }
  0xf3   :  { %224 = vst.msk [vmem:[%s416_s6] sm:$0xff] %vm67_vm0, %v223_v12 }

// kernel: _residual_forward.4
= control target key start
LH: loop header
LB: loop body
LE: loop exit
PB: predicated region body
PF: predicated region fallthrough
CT: control target
= control target key end

     0   :  { %v713_v0 = vmov 0   ;;  %vm66_vm0 = vcmask 1040384   ;;  %vm165_vm1 = vcmask 523264   ;;  %vm107_vm2 = vcmask 1046528   ;;  %s936_s5 = inlined_call_operand.vmem [shape: f32[32,1], index: 5, kind: input, shape index: {}]   ;;  %s937_s3 = inlined_call_operand.vmem [shape: f32[3,64,64], index: 3, kind: input, shape index: {}]   ;;  %s938_s6 = inlined_call_operand.vmem [shape: f32[32,1], index: 6, kind: input, shape index: {}]   ;;  %s939_s0 = inlined_call_operand.vmem [shape: bf16[32,64], index: 0, kind: input, shape index: {}]   ;;  %s940_s1 = inlined_call_operand.vmem [shape: f32[1,64], index: 1, kind: input, shape index: {}]   ;;  %s941_s2 = inlined_call_operand.vmem [shape: f32[1,64], index: 2, kind: input, shape index: {}]   ;;  %s942_s4 = inlined_call_operand.vmem [shape: f32[1,64], index: 4, kind: input, shape index: {}]   ;;  %s943_s7 = inlined_call_operand.vmem [shape: bf16[32,64], index: 7, kind: output, shape index: {0}]   ;;  %s944_s8 = inlined_call_operand.vmem [shape: f32[8,64], index: 8, kind: output, shape index: {1}]  }
   0x1   :  { %712 = vset.pattern.permute.xlu1 %v713_v0  ;;  %711 = vset.pattern.permute.xlu0 %v713_v0  ;;  %v81_v1 = vld [vmem:[%s936_s5 + $0x10] sm:$0xff]  ;;  %v79_v2 = vld [vmem:[%s936_s5] sm:$0xff]  ;;  %v82_v3 = vld [vmem:[%s936_s5 + $0x18] sm:$0xff]  ;;  %vm493_vm3 = vcmask 519168   ;;  %vm533_vm4 = vcmask 1041408  }
   0x2   :  { %95 = vperm.xlu1 %712, %v81_v1   ;;  %85 = vperm.xlu0 %711, %v79_v2   ;;  %v80_v4 = vld [vmem:[%s936_s5 + $0x8] sm:$0xff]  ;;  %v553_v5 = vld [vmem:[%s937_s3 + $0x78] sm:$0xff]  ;;  %v552_v6 = vld [vmem:[%s937_s3 + $0x70] sm:$0xff] }
   0x3   :  { %650 = vmatprep.subr.mxu1 %v553_v5  ;;  %v164_v7 = vld [vmem:[%s937_s3 + $0x38] sm:$0xff]  ;;  %v163_v8 = vld [vmem:[%s937_s3 + $0x30] sm:$0xff]  ;;  %v551_v9 = vld [vmem:[%s937_s3 + $0x68] sm:$0xff] }
   0x4   :  { %651 = vmatpush3.msra.mxu1 %v553_v5  ;;  %628 = vmatprep.subr.mxu0 %v164_v7  ;;  %v121_v10 = vld [vmem:[%s938_s6 + $0x8] sm:$0xff]  ;;  %v120_v11 = vld [vmem:[%s938_s6] sm:$0xff]  ;;  %v123_v23 = vld [vmem:[%s938_s6 + $0x18] sm:$0xff] }
   0x5   :  { %652 = vmatprep.subr.mxu1 %v552_v6  ;;  %629 = vmatpush3.msra.mxu0 %v164_v7  ;;  %v162_v12 = vld [vmem:[%s937_s3 + $0x28] sm:$0xff]  ;;  %v584_v13 = vld [vmem:[%s939_s0] sm:$0xff]   ;;  %v122_v24 = vld [vmem:[%s938_s6 + $0x10] sm:$0xff] }
   0x6   :  { %100 = vperm.xlu1 %712, %v82_v3   ;;  %90 = vperm.xlu0 %711, %v80_v4   ;;  %v591_v14 = vld [vmem:[%s939_s0 + $0x8] sm:$0xff]   ;;  %v544_v15 = vld [vmem:[%s940_s1] ss:$0 sm:$0xff]  ;;  %v586_v17 = vunpack.c.h.bf16 %v584_v13  ;;  %v585_v19 = vunpack.c.l.bf16 %v584_v13  ;;  %v549_v28 = vld [vmem:[%s937_s3 + $0x58] sm:$0xff] }
   0x7   :  { %653 = vmatpush3.msra.mxu1 %v552_v6  ;;  %630 = vmatprep.subr.mxu0 %v163_v8  ;;  %v550_v16 = vld [vmem:[%s937_s3 + $0x60] sm:$0xff]  ;;  %v589_v18 = vunpack.c.l.bf16 %v591_v14  ;;  %v590_v20 = vunpack.c.h.bf16 %v591_v14  ;;  %v160_v30 = vld [vmem:[%s937_s3 + $0x18] sm:$0xff]  ;;  %v548_v34 = vld [vmem:[%s937_s3 + $0x50] sm:$0xff] }
   0x8   :  { %654 = vmatprep.subr.mxu1 %v551_v9  ;;  %631 = vmatpush3.msra.mxu0 %v163_v8  ;;  %v161_v21 = vld [vmem:[%s937_s3 + $0x20] sm:$0xff]  ;;  %v44_v25 = vmul.f32 %v586_v17, %v544_v15  ;;  %v43_v27 = vmul.f32 %v585_v19, %v544_v15  ;;  %v159_v39 = vld [vmem:[%s937_s3 + $0x10] sm:$0xff]  ;;  %v547_v40 = vld [vmem:[%s937_s3 + $0x48] sm:$0xff] }
   0x9   :  { %v545_v22 = vld [vmem:[%s941_s2] ss:$0 sm:$0xff]  ;;  %655 = vmatpush3.msra.mxu1 %v551_v9  ;;  %632 = vmatprep.subr.mxu0 %v162_v12  ;;  %v45_v26 = vmul.f32 %v589_v18, %v544_v15  ;;  %v46_v29 = vmul.f32 %v590_v20, %v544_v15  ;;  %v158_v47 = vld [vmem:[%s937_s3 + $0x8] sm:$0xff]  ;;  %v569_v54 = vld [vmem:[%s937_s3 + $0xb8] sm:$0xff] }
   0xa   :  { %131 = vperm.xlu1 %712, %v121_v10   ;;  %126 = vperm.xlu0 %711, %v120_v11   ;;  %v55_v31 = vadd.f32 %v545_v22, %v44_v25  ;;  %v54_v33 = vadd.f32 %v545_v22, %v43_v27  ;;  %v546_v46 = vld [vmem:[%s937_s3 + $0x40] sm:$0xff]  ;;  %v568_v60 = vld [vmem:[%s937_s3 + $0xb0] sm:$0xff]  ;;  %v567_v61 = vld [vmem:[%s937_s3 + $0xa8] sm:$0xff] }
   0xb   :  { %656 = vmatprep.subr.mxu1 %v550_v16  ;;  %633 = vmatpush3.msra.mxu0 %v162_v12  ;;  %v56_v32 = vadd.f32 %v545_v22, %v45_v26  ;;  %v57_v35 = vadd.f32 %v545_v22, %v46_v29  ;;  %v157_v58 = vld [vmem:[%s937_s3] sm:$0xff]  ;;  %v565_v63 = vld [vmem:[%s937_s3 + $0x98] sm:$0xff]  ;;  %v564_v0 = vld [vmem:[%s937_s3 + $0x90] sm:$0xff] }
   0xc   :  { %657 = vmatpush3.msra.mxu1 %v550_v16  ;;  %634 = vmatprep.subr.mxu0 %v161_v21  ;;  %v59_v36 = vmax.f32 %v55_v31, 0.0  ;;  %v828_v38 = vmax.f32 %v54_v33, 0.0  ;;  %v566_v62 = vld [vmem:[%s937_s3 + $0xa0] sm:$0xff]  ;;  %v563_v1 = vld [vmem:[%s937_s3 + $0x88] sm:$0xff] }
   0xd   :  { %658 = vmatprep.subr.mxu1 %v549_v28  ;;  %635 = vmatpush3.msra.mxu0 %v161_v21  ;;  %v60_v37 = vmax.f32 %v56_v32, 0.0  ;;  %v836_v41 = vmax.f32 %v57_v35, 0.0  ;;  %v562_v2 = vld [vmem:[%s937_s3 + $0x80] sm:$0xff] }
   0xe   :  { %141 = vperm.xlu1 %712, %v123_v23   ;;  %136 = vperm.xlu0 %711, %v122_v24   ;;  %v68_v42 = vrot.slane %v59_v36, 7  ;;  %v67_v44 = vrot.slane %v828_v38, 7  ;;  %v109_v45 = vrot.slane %v59_v36, 1  ;;  %v108_v50 = vrot.slane %v828_v38, 1  ;;  %v574_v31 = vld [vmem:[%s942_s4] ss:$0 sm:$0xff] }
   0xf   :  { %659 = vmatpush3.msra.mxu1 %v549_v28  ;;  %636 = vmatprep.subr.mxu0 %v160_v30  ;;  %v70_v43 = vrot.slane %v60_v37, 7  ;;  %v72_v48 = vrot.slane %v836_v41, 7  ;;  %v111_v49 = vrot.slane %v60_v37, 1  ;;  %v113_v51 = vrot.slane %v836_v41, 1 }
  0x10   :  { %660 = vmatprep.subr.mxu1 %v548_v34  ;;  %637 = vmatpush3.msra.mxu0 %v160_v30  ;;  %v69_v53 = vsel %vm66_vm0, %v67_v44, %v68_v42  ;;  %v110_v57 = vsel %vm107_vm2, %v108_v50, %v109_v45  ;;  %v78_v3 = vsel %vm66_vm0, 0.0, %v67_v44 }
  0x11   :  { %661 = vmatpush3.msra.mxu1 %v548_v34  ;;  %638 = vmatprep.subr.mxu0 %v159_v39  ;;  %v71_v52 = vsel %vm66_vm0, %v68_v42, %v70_v43  ;;  %v73_v55 = vsel %vm66_vm0, %v70_v43, %v72_v48  ;;  %v857_v56 = vsel %vm107_vm2, %v109_v45, %v111_v49  ;;  %v119_v15 = vsel %vm107_vm2, %v113_v51, 0.0 }
  0x12   :  { %662 = vmatprep.subr.mxu1 %v547_v40  ;;  %666 = vmatprep.mubr.msk.f32.mxu1 %vm165_vm1, %v828_v38  ;;  %v114_v59 = vsel %vm107_vm2, %v111_v49, %v113_v51 }
  0x13   :  { %663 = vmatpush3.msra.mxu1 %v547_v40  ;;  %639 = vmatpush3.msra.mxu0 %v159_v39 }
  0x14   :  { %664 = vmatprep.subr.mxu1 %v546_v46  ;;  %640 = vmatprep.subr.mxu0 %v158_v47 }
  0x15   :  { %665 = vmatpush3.msra.mxu1 %v546_v46  ;;  %641 = vmatpush3.msra.mxu0 %v158_v47 }
  0x16   :  { %694 = vmatprep.subr.mxu1 %v569_v54  ;;  %667 = vmatmul.mubr.msk.f32.vlgmr.msra.gmra.mxu1 %vm165_vm1, %v59_v36 }
  0x17   :  { %702 = vmatpush3.msra.mxu1 %v569_v54  ;;  %642 = vmatprep.subr.mxu0 %v157_v58 }
  0x18   :  { %695 = vmatprep.subr.mxu1 %v568_v60  ;;  %643 = vmatpush3.msra.mxu0 %v157_v58 }
  0x19   :  { %703 = vmatpush3.msra.mxu1 %v568_v60  ;;  %672 = vmatprep.subr.mxu0 %v569_v54 }
  0x1a   :  { %696 = vmatprep.subr.mxu1 %v567_v61  ;;  %669 = vmatprep.mubr.msk.f32.mxu1 %vm165_vm1, %v60_v37 }
  0x1b   :  { %704 = vmatpush3.msra.mxu1 %v567_v61 }
  0x1c   :  { %697 = vmatprep.subr.mxu1 %v566_v62  ;;  %670 = vmatmul.mubr.msk.f32.gmra.mxu1 %vm165_vm1, %v836_v41 }
  0x1d   :  { %705 = vmatpush3.msra.mxu1 %v566_v62 }
  0x1e   :  { %698 = vmatprep.subr.mxu1 %v565_v63 }
  0x1f   :  { %706 = vmatpush3.msra.mxu1 %v565_v63 }
  0x20   :  { %699 = vmatprep.subr.mxu1 %v564_v0 }
  0x21   :  { %707 = vmatpush3.msra.mxu1 %v564_v0 }
  0x22   :  { %700 = vmatprep.subr.mxu1 %v563_v1 }
  0x23   :  { %708 = vmatpush3.msra.mxu1 %v563_v1 }
  0x24   :  { %701 = vmatprep.subr.mxu1 %v562_v2 }
  0x25   :  { %709 = vmatpush3.msra.mxu1 %v562_v2 }
  0x7d   :  { %v96_v4 = vpop.permute.xlu1 %95  ;;  %v86_v5 = vpop.permute.xlu0 %85 }
  0x7e   :  { %v103_v6 = vmul.f32 %v86_v5, %v78_v3  ;;  %v105_v7 = vmul.f32 %v96_v4, %v71_v52 }
  0x80   :  { %644 = vmatprep.mubr.msk.f32.mxu0 %vm165_vm1, %v103_v6 }
  0x81   :  { %v101_v8 = vpop.permute.xlu1 %100  ;;  %v91_v9 = vpop.permute.xlu0 %90 }
  0x82   :  { %v104_v10 = vmul.f32 %v91_v9, %v69_v53  ;;  %v106_v11 = vmul.f32 %v101_v8, %v73_v55 }
  0x84   :  { %645 = vmatmul.mubr.msk.f32.vlgmr.msra.gmra.mxu0 %vm165_vm1, %v104_v10 }
  0x85   :  { %673 = vmatpush3.msra.mxu0 %v569_v54  ;;  %v132_v12 = vpop.permute.xlu1 %131  ;;  %v127_v13 = vpop.permute.xlu0 %126  ;;  %647 = vmatprep.mubr.msk.f32.mxu0 %vm165_vm1, %v105_v7 }
  0x86   :  { %v144_v14 = vmul.f32 %v127_v13, %v110_v57  ;;  %674 = vmatprep.subr.mxu0 %v568_v60  ;;  %v145_v20 = vmul.f32 %v132_v12, %v857_v56 }
  0x87   :  { %675 = vmatpush3.msra.mxu0 %v568_v60 }
  0x88   :  { %676 = vmatprep.subr.mxu0 %v567_v61  ;;  %648 = vmatmul.mubr.msk.f32.gmra.mxu0 %vm165_vm1, %v106_v11 }
  0x89   :  { %677 = vmatpush3.msra.mxu0 %v567_v61  ;;  %v142_v16 = vpop.permute.xlu1 %141  ;;  %v137_v17 = vpop.permute.xlu0 %136  ;;  %688 = vmatprep.mubr.msk.f32.mxu0 %vm165_vm1, %v144_v14 }
  0x8a   :  { %v147_v18 = vmul.f32 %v142_v16, %v119_v15  ;;  %v146_v19 = vmul.f32 %v137_v17, %v114_v59  ;;  %678 = vmatprep.subr.mxu0 %v566_v62 }
  0x8b   :  { %679 = vmatpush3.msra.mxu0 %v566_v62 }
  0x8c   :  { %680 = vmatprep.subr.mxu0 %v565_v63  ;;  %691 = vmatprep.mubr.msk.f32.mxu1 %vm165_vm1, %v146_v19 }
  0x8d   :  { %681 = vmatpush3.msra.mxu0 %v565_v63  ;;  %692 = vmatmul.mubr.msk.f32.vlgmr.msra.gmra.mxu1 %vm165_vm1, %v147_v18 }
  0x8e   :  { %682 = vmatprep.subr.mxu0 %v564_v0 }
  0x8f   :  { %683 = vmatpush3.msra.mxu0 %v564_v0 }
  0x90   :  { %684 = vmatprep.subr.mxu0 %v563_v1 }
  0x91   :  { %685 = vmatpush3.msra.mxu0 %v563_v1 }
  0x92   :  { %686 = vmatprep.subr.mxu0 %v562_v2 }
  0x93   :  { %687 = vmatpush3.msra.mxu0 %v562_v2 }
  0x94   :  { %689 = vmatmul.mubr.msk.f32.vlgmr.msra.gmra.mxu0 %vm165_vm1, %v145_v20 }
  0xd6   :  { %v668_v21 = vpop.f32.mrf.mxu1 }
  0xd8   :  { %v337_v22 = vpop.f32.mrf.mxu1 }
  0xdc   :  { %v671_v24 = vpop.f32.mrf.mxu1 }
  0xde   :  { %v347_v27 = vpop.f32.mrf.mxu1 }
 0x144   :  { %v646_v23 = vpop.f32.mrf.mxu0 }
 0x145   :  { %v343_v39 = vadd.f32 %v668_v21, %v646_v23 }
 0x146   :  { %v244_v25 = vpop.f32.mrf.mxu0 }
 0x147   :  { %v338_v42 = vadd.f32 %v337_v22, %v244_v25 }
 0x148   :  { %v649_v26 = vpop.f32.mrf.mxu0 }
 0x149   :  { %v353_v29 = vadd.f32 %v671_v24, %v649_v26 }
 0x14a   :  { %v254_v28 = vpop.f32.mrf.mxu0 }
 0x14b   :  { %v348_v32 = vadd.f32 %v347_v27, %v254_v28 }
 0x14d   :  { %v693_v30 = vpop.f32.mrf.mxu1 }
 0x14e   :  { %v465_v33 = vadd.f32 %v693_v30, %v353_v29 }
 0x14f   :  { %v453_v34 = vpop.f32.mrf.mxu1 }
 0x150   :  { %v476_v35 = vadd.f32 %v574_v31, %v465_v33  ;;  %v464_v36 = vadd.f32 %v453_v34, %v348_v32 }
 0x152   :  { %v582_v37 = vpack.c.bf16 %v476_v35, %v476_v35  ;;  %v475_v38 = vadd.f32 %v574_v31, %v464_v36 }
 0x154   :  { %497 = vst.msk [vmem:[%s943_s7 + $0xc] sm:$0xf] %vm493_vm3, %v582_v37  ;;  %v581_v40 = vpack.c.bf16 %v475_v38, %v475_v38  ;;  %v690_v41 = vpop.f32.mrf.mxu0  ;;  %v478_v44 = vpack.c.bf16 %v476_v35, %v475_v38 }
 0x155   :  { %v463_v43 = vadd.f32 %v690_v41, %v343_v39 }
 0x156   :  { %496 = vst.msk [vmem:[%s943_s7 + $0x8] sm:$0xf] %vm493_vm3, %v581_v40  ;;  %v443_v45 = vpop.f32.mrf.mxu0  ;;  %v500_v50 = vunpack.c.l.bf16 %v478_v44  ;;  %v501_v53 = vunpack.c.h.bf16 %v478_v44 }
 0x157   :  { %v474_v46 = vadd.f32 %v574_v31, %v463_v43  ;;  %v462_v47 = vadd.f32 %v443_v45, %v338_v42 }
 0x158   :  { %v517_v56 = vmul.f32 %v500_v50, %v500_v50  ;;  %v505_v62 = vsel %vm165_vm1, %v500_v50, 0.0  ;;  %v518_v63 = vmul.f32 %v501_v53, %v501_v53  ;;  %v507_v4 = vsel %vm165_vm1, %v501_v53, 0.0 }
 0x159   :  { %v580_v48 = vpack.c.bf16 %v474_v46, %v474_v46  ;;  %v473_v49 = vadd.f32 %v574_v31, %v462_v47 }
 0x15a   :  { %v522_v5 = vsel %vm165_vm1, %v517_v56, 0.0  ;;  %v524_v8 = vsel %vm165_vm1, %v518_v63, 0.0 }
 0x15b   :  { %495 = vst.msk [vmem:[%s943_s7 + $0x4] sm:$0xf] %vm493_vm3, %v580_v48  ;;  %v477_v51 = vpack.c.bf16 %v474_v46, %v473_v49  ;;  %v579_v52 = vpack.c.bf16 %v473_v49, %v473_v49 }
 0x15d   :  { %494 = vst.msk [vmem:[%s943_s7] sm:$0xf] %vm493_vm3, %v579_v52  ;;  %v498_v54 = vunpack.c.l.bf16 %v477_v51  ;;  %v499_v55 = vunpack.c.h.bf16 %v477_v51 }
 0x15f   :  { %v502_v57 = vsel %vm165_vm1, %v498_v54, 0.0  ;;  %v503_v58 = vsel %vm165_vm1, %v499_v55, 0.0  ;;  %v515_v59 = vmul.f32 %v498_v54, %v498_v54  ;;  %v516_v60 = vmul.f32 %v499_v55, %v499_v55 }
 0x160   :  { %v504_v61 = vadd.f32 %v503_v58, %v502_v57 }
 0x161   :  { %v519_v0 = vsel %vm165_vm1, %v515_v59, 0.0  ;;  %v520_v1 = vsel %vm165_vm1, %v516_v60, 0.0 }
 0x162   :  { %v506_v2 = vadd.f32 %v505_v62, %v504_v61  ;;  %v521_v3 = vadd.f32 %v520_v1, %v519_v0 }
 0x164   :  { %v508_v6 = vadd.f32 %v507_v4, %v506_v2  ;;  %v523_v7 = vadd.f32 %v522_v5, %v521_v3 }
 0x166   :  { %v509_v9 = vrot.slane %v508_v6, 4  ;;  %v525_v10 = vadd.f32 %v524_v8, %v523_v7 }
 0x168   :  { %v510_v11 = vadd.f32 %v509_v9, %v508_v6  ;;  %v526_v12 = vrot.slane %v525_v10, 4 }
 0x16a   :  { %v511_v13 = vrot.slane %v510_v11, 2  ;;  %v527_v14 = vadd.f32 %v526_v12, %v525_v10 }
 0x16c   :  { %v512_v15 = vadd.f32 %v511_v13, %v510_v11  ;;  %v528_v16 = vrot.slane %v527_v14, 2 }
 0x16e   :  { %v513_v17 = vrot.slane %v512_v15, 1  ;;  %v529_v18 = vadd.f32 %v528_v16, %v527_v14 }
 0x170   :  { %v530_v19 = vrot.slane %v529_v18, 1  ;;  %v514_v20 = vadd.f32 %v513_v17, %v512_v15 }
 0x172   :  { %v531_v21 = vadd.f32 %v530_v19, %v529_v18 }
 0x174   :  { %v532_v22 = vsel %vm66_vm0, %v514_v20, %v531_v21 }
 0x175   :  { %v534_v23 = vsel %vm533_vm4, %v532_v22, 0.0 }
 0x176   :  { %535 = vst.msk [vmem:[%s944_s8] sm:$0xff] %vm165_vm1, %v534_v23 }

// kernel: _residual_forward.5
= control target key start
LH: loop header
LB: loop body
LE: loop exit
PB: predicated region body
PF: predicated region fallthrough
CT: control target
= control target key end

     0   :  { %vm78_vm0 = vcmask 523264   ;;  %s540_s3 = inlined_call_operand.vmem [shape: f32[64,128], index: 3, kind: input, shape index: {}]   ;;  %s541_s6 = inlined_call_operand.vmem [shape: f32[64,128], index: 6, kind: input, shape index: {}]   ;;  %s542_s0 = inlined_call_operand.vmem [shape: bf16[32,64], index: 0, kind: input, shape index: {}]   ;;  %s543_s1 = inlined_call_operand.vmem [shape: f32[1,64], index: 1, kind: input, shape index: {}]   ;;  %s544_s2 = inlined_call_operand.vmem [shape: f32[1,64], index: 2, kind: input, shape index: {}]   ;;  %s545_s5 = inlined_call_operand.vmem [shape: f32[32,64], index: 5, kind: input, shape index: {}]   ;;  %s546_s4 = inlined_call_operand.vmem [shape: f32[1,128], index: 4, kind: input, shape index: {}]   ;;  %s547_s7 = inlined_call_operand.vmem [shape: f32[1,128], index: 7, kind: input, shape index: {}]   ;;  %s548_s8 = inlined_call_operand.vmem [shape: f32[32,128], index: 8, kind: output, shape index: {}]  }
   0x1   :  { %v70_v0 = vld [vmem:[%s540_s3 + $0x38] sm:$0xff]  ;;  %v69_v2 = vld [vmem:[%s540_s3 + $0x30] sm:$0xff]  ;;  %v68_v4 = vld [vmem:[%s540_s3 + $0x28] sm:$0xff] }
   0x2   :  { %v187_v1 = vld [vmem:[%s541_s6 + $0x38] sm:$0xff]  ;;  %353 = vmatprep.subr.mxu0 %v70_v0  ;;  %v186_v3 = vld [vmem:[%s541_s6 + $0x30] sm:$0xff]  ;;  %v185_v5 = vld [vmem:[%s541_s6 + $0x28] sm:$0xff] }
   0x3   :  { %375 = vmatprep.subr.mxu1 %v187_v1  ;;  %354 = vmatpush3.msra.mxu0 %v70_v0  ;;  %v67_v6 = vld [vmem:[%s540_s3 + $0x20] sm:$0xff]  ;;  %v328_v9 = vld [vmem:[%s542_s0 + $0x8] sm:$0xff]   ;;  %v66_v10 = vld [vmem:[%s540_s3 + $0x18] sm:$0xff] }
   0x4   :  { %376 = vmatpush3.msra.mxu1 %v187_v1  ;;  %355 = vmatprep.subr.mxu0 %v69_v2  ;;  %v184_v7 = vld [vmem:[%s541_s6 + $0x20] sm:$0xff]  ;;  %v183_v11 = vld [vmem:[%s541_s6 + $0x18] sm:$0xff]  ;;  %v326_v14 = vunpack.c.l.bf16 %v328_v9  ;;  %v327_v15 = vunpack.c.h.bf16 %v328_v9  ;;  %v65_v18 = vld [vmem:[%s540_s3 + $0x10] sm:$0xff] }
   0x5   :  { %377 = vmatprep.subr.mxu1 %v186_v3  ;;  %356 = vmatpush3.msra.mxu0 %v69_v2  ;;  %v321_v8 = vld [vmem:[%s542_s0] sm:$0xff]   ;;  %v182_v19 = vld [vmem:[%s541_s6 + $0x10] sm:$0xff]  ;;  %v64_v23 = vld [vmem:[%s540_s3 + $0x8] sm:$0xff] }
   0x6   :  { %378 = vmatpush3.msra.mxu1 %v186_v3  ;;  %357 = vmatprep.subr.mxu0 %v68_v4  ;;  %v322_v12 = vunpack.c.l.bf16 %v321_v8  ;;  %v323_v13 = vunpack.c.h.bf16 %v321_v8  ;;  %v308_v16 = vld [vmem:[%s543_s1] ss:$0 sm:$0xff]  ;;  %v181_v24 = vld [vmem:[%s541_s6 + $0x8] sm:$0xff]  ;;  %v178_v37 = vld [vmem:[%s545_s5 + $0x10] sm:$0xff] }
   0x7   :  { %379 = vmatprep.subr.mxu1 %v185_v5  ;;  %358 = vmatpush3.msra.mxu0 %v68_v4  ;;  %v309_v17 = vld [vmem:[%s544_s2] ss:$0 sm:$0xff]  ;;  %v46_v22 = vmul.f32 %v326_v14, %v308_v16  ;;  %v47_v27 = vmul.f32 %v327_v15, %v308_v16  ;;  %v177_v35 = vld [vmem:[%s545_s5 + $0x8] sm:$0xff]  ;;  %v179_v39 = vld [vmem:[%s545_s5 + $0x18] sm:$0xff] }
   0x8   :  { %380 = vmatpush3.msra.mxu1 %v185_v5  ;;  %359 = vmatprep.subr.mxu0 %v67_v6  ;;  %v44_v20 = vmul.f32 %v322_v12, %v308_v16  ;;  %v45_v21 = vmul.f32 %v323_v13, %v308_v16  ;;  %v63_v29 = vld [vmem:[%s540_s3] sm:$0xff] }
   0x9   :  { %381 = vmatprep.subr.mxu1 %v184_v7  ;;  %360 = vmatpush3.msra.mxu0 %v67_v6  ;;  %v57_v28 = vadd.f32 %v309_v17, %v46_v22  ;;  %v180_v30 = vld [vmem:[%s541_s6] sm:$0xff]  ;;  %v58_v34 = vadd.f32 %v309_v17, %v47_v27 }
   0xa   :  { %382 = vmatpush3.msra.mxu1 %v184_v7  ;;  %361 = vmatprep.subr.mxu0 %v66_v10  ;;  %v55_v25 = vadd.f32 %v309_v17, %v44_v20  ;;  %v56_v26 = vadd.f32 %v309_v17, %v45_v21  ;;  %v176_v32 = vld [vmem:[%s545_s5] sm:$0xff] }
   0xb   :  { %383 = vmatprep.subr.mxu1 %v183_v11  ;;  %362 = vmatpush3.msra.mxu0 %v66_v10  ;;  %v61_v36 = vmax.f32 %v57_v28, 0.0  ;;  %v62_v38 = vmax.f32 %v58_v34, 0.0  ;;  %v310_v40 = vld [vmem:[%s546_s4] ss:$0 sm:$0xff] }
   0xc   :  { %384 = vmatpush3.msra.mxu1 %v183_v11  ;;  %363 = vmatprep.subr.mxu0 %v65_v18  ;;  %v59_v31 = vmax.f32 %v55_v25, 0.0  ;;  %v60_v33 = vmax.f32 %v56_v26, 0.0  ;;  %v319_v44 = vld [vmem:[%s547_s7] ss:$0 sm:$0xff] }
   0xd   :  { %385 = vmatprep.subr.mxu1 %v182_v19  ;;  %364 = vmatpush3.msra.mxu0 %v65_v18 }
   0xe   :  { %386 = vmatpush3.msra.mxu1 %v182_v19  ;;  %365 = vmatprep.subr.mxu0 %v64_v23 }
   0xf   :  { %387 = vmatprep.subr.mxu1 %v181_v24  ;;  %366 = vmatpush3.msra.mxu0 %v64_v23 }
  0x10   :  { %388 = vmatpush3.msra.mxu1 %v181_v24  ;;  %367 = vmatprep.subr.mxu0 %v63_v29 }
  0x11   :  { %389 = vmatprep.subr.mxu1 %v180_v30  ;;  %368 = vmatpush3.msra.mxu0 %v63_v29 }
  0x12   :  { %369 = vmatprep.mubr.msk.f32.mxu0 %vm78_vm0, %v59_v31  ;;  %390 = vmatpush3.msra.mxu1 %v180_v30 }
  0x13   :  { %391 = vmatprep.mubr.msk.f32.mxu1 %vm78_vm0, %v176_v32  ;;  %370 = vmatmul.mubr.msk.f32.vlgmr.msra.gmra.mxu0 %vm78_vm0, %v60_v33 }
  0x14   :  { %392 = vmatmul.mubr.msk.f32.vlgmr.msra.gmra.mxu1 %vm78_vm0, %v177_v35  ;;  %372 = vmatprep.mubr.msk.f32.mxu0 %vm78_vm0, %v61_v36 }
  0x15   :  { %394 = vmatprep.mubr.msk.f32.mxu1 %vm78_vm0, %v178_v37 }
  0x17   :  { %373 = vmatmul.mubr.msk.f32.gmra.mxu0 %vm78_vm0, %v62_v38 }
  0x18   :  { %395 = vmatmul.mubr.msk.f32.gmra.mxu1 %vm78_vm0, %v179_v39 }
  0xd3   :  { %v371_v41 = vpop.f32.mrf.mxu0 }
  0xd4   :  { %v393_v42 = vpop.f32.mrf.mxu1  ;;  %v163_v43 = vadd.f32 %v371_v41, %v310_v40 }
  0xd5   :  { %v157_v45 = vpop.f32.mrf.mxu0 }
  0xd6   :  { %v266_v46 = vpop.f32.mrf.mxu1  ;;  %v286_v47 = vadd.f32 %v393_v42, %v163_v43  ;;  %v158_v48 = vadd.f32 %v310_v40, %v157_v45 }
  0xd7   :  { %v374_v49 = vpop.f32.mrf.mxu0 }
  0xd8   :  { %v396_v50 = vpop.f32.mrf.mxu1  ;;  %v297_v51 = vadd.f32 %v319_v44, %v286_v47  ;;  %v285_v52 = vadd.f32 %v266_v46, %v158_v48  ;;  %v173_v53 = vadd.f32 %v374_v49, %v310_v40 }
  0xd9   :  { %v167_v54 = vpop.f32.mrf.mxu0 }
  0xda   :  { %301 = vst [vmem:[%s548_s8 + $0x8] sm:$0xff] %v297_v51  ;;  %v296_v55 = vadd.f32 %v319_v44, %v285_v52  ;;  %v288_v56 = vadd.f32 %v396_v50, %v173_v53  ;;  %v168_v57 = vadd.f32 %v310_v40, %v167_v54  ;;  %v276_v58 = vpop.f32.mrf.mxu1 }
  0xdc   :  { %300 = vst [vmem:[%s548_s8] sm:$0xff] %v296_v55  ;;  %v299_v59 = vadd.f32 %v319_v44, %v288_v56  ;;  %v287_v60 = vadd.f32 %v276_v58, %v168_v57 }
  0xde   :  { %303 = vst [vmem:[%s548_s8 + $0x18] sm:$0xff] %v299_v59  ;;  %v298_v61 = vadd.f32 %v319_v44, %v287_v60 }
  0xe0   :  { %302 = vst [vmem:[%s548_s8 + $0x10] sm:$0xff] %v298_v61 }

</bundles_post_ra>
